<compile_context>
chip_gen: v7x
topology: tpu7x:2x2x1
jax: 0.10.0
libtpu: 0.0.40
codegen_flags: <defaults>
</compile_context>

<pallas_src>
import functools

import jax
import jax.numpy as jnp
from jax.experimental import pallas as pl
from jax.experimental.pallas import tpu as pltpu


def lstm_recurrence_kernel(xw_ref, h0_ref, c0_ref, whh_ref,
                           h_seq_ref, h_n_ref, c_n_ref,
                           *, time_block, seq_len, hidden_size):
    """One grid step == `time_block` LSTM timesteps for one batch chunk.

    Grid = (batch_chunks [parallel], time_chunks [arbitrary]).
    """
    t_chunk = pl.program_id(1)
    H = hidden_size

    # h_n_ref / c_n_ref have t-constant index maps -> VMEM-resident across the
    # sequential time axis; they carry the recurrence state between chunks.
    @pl.when(t_chunk == 0)
    def _():
        h_n_ref[...] = h0_ref[...]
        c_n_ref[...] = c0_ref[...]

    whh = whh_ref[...]                        # (H, 4H) bf16, resident in VMEM

    # Read the carried state ONCE per chunk and chain it through registers
    # inside the unrolled loop (no per-step VMEM store/load on the serial
    # critical path).  At very large B*H the compiler will spill, which is no
    # worse than the explicit ref carry.
    h = h_n_ref[0]                            # (B, H) f32
    c = c_n_ref[0]                            # (B, H) f32

    needs_mask = (seq_len % time_block) != 0  # static Python condition

    for j in range(time_block):               # fully unrolled, static indices
        # Input projection (+ biases) was precomputed outside the recurrence
        # (stored bf16, upcast here); only h @ W_hh^T stays on the serial path.
        gates = xw_ref[j].astype(jnp.float32) + jnp.dot(
            h.astype(jnp.bfloat16), whh, preferred_element_type=jnp.float32)

        # PyTorch gate order [i, f, g, o].
        i_g = jax.nn.sigmoid(gates[:, 0 * H:1 * H])
        f_g = jax.nn.sigmoid(gates[:, 1 * H:2 * H])
        g_g = jnp.tanh(gates[:, 2 * H:3 * H])
        o_g = jax.nn.sigmoid(gates[:, 3 * H:4 * H])

        c_new = f_g * c + i_g * g_g
        h_new = o_g * jnp.tanh(c_new)

        if needs_mask:
            # Only the zero-padded tail of the last chunk is invalid: keep the
            # previous state there so h_n / c_n stay correct.
            valid = (t_chunk * time_block + j) < seq_len
            h_new = jnp.where(valid, h_new, h)
            c_new = jnp.where(valid, c_new, c)

        h_seq_ref[j] = h_new                   # per-step output store only
        h = h_new
        c = c_new

    # Single writeback of the carried state per chunk.
    h_n_ref[0] = h
    c_n_ref[0] = c


def mdn_head_kernel(h_ref, w_ref, b_ref, out_ref):
    """Batched, lane-dense MDN linear head: (rows, H) @ (H, Dout_pad) + b."""
    out_ref[...] = (jnp.dot(h_ref[...], w_ref[...],
                            preferred_element_type=jnp.float32)
                    + b_ref[...])


def mdnrnn_forward(actions, z_dim, hidden, params, *, z_dim_size, dist_amount,
                   time_block=16, batch_block=None):
    """Mirrors MDNRNN.forward: returns (mus, sigmas, log_pis, (h_n, c_n))."""
    h0, c0 = hidden
    h0 = h0.astype(jnp.float32)
    c0 = c0.astype(jnp.float32)
    inp = jnp.concatenate([actions, z_dim], axis=-1)
    S, B, _ = inp.shape
    H = h0.shape[-1]
    Dout = params["w_mdn"].shape[0]

    time_block = max(1, min(time_block, S))
    n_chunks = pl.cdiv(S, time_block)
    S_pad = n_chunks * time_block

    # Batch chunking for the parallel grid axis (v7x megacore).  Keep the
    # degenerate single-chunk case unless B divides evenly.
    if batch_block is None:
        Bblk = B
    else:
        Bblk = min(batch_block, B)
        if B % Bblk != 0:
            Bblk = B
    n_bblk = B // Bblk

    wih_t = params["w_ih"].T.astype(jnp.bfloat16)                # (Din, 4H)
    whh_t = params["w_hh"].T.astype(jnp.bfloat16)                # (H, 4H)
    bias = (params["b_ih"] + params["b_hh"]).astype(jnp.float32)

    # (1) Input projection for ALL timesteps at once: one big parallel matmul
    #     (plain XLA, bf16 operands, f32 accumulate), removed from the serial
    #     recurrence.  Stored bf16 to halve the HBM stream into the kernel.
    xw = (jnp.einsum("sbd,dg->sbg", inp.astype(jnp.bfloat16), wih_t,
                     preferred_element_type=jnp.float32)
          + bias).astype(jnp.bfloat16)                            # (S, B, 4H)
    if S_pad != S:
        xw = jnp.pad(xw, ((0, S_pad - S), (0, 0), (0, 0)))

    # Explicit scoped-VMEM budget for the recurrence (double-buffered blocks).
    est_bytes = (2 * time_block * Bblk * 4 * H * 2      # xw  (bf16 in)
                 + 2 * time_block * Bblk * H * 4        # h_seq (f32 out)
                 + 2 * H * 4 * H * 2                    # W_hh^T (bf16)
                 + 8 * Bblk * H * 4)                    # h0/c0/h_n/c_n
    vmem_limit = int(min(64 * 1024 * 1024,
                         max(32 * 1024 * 1024, 2 * est_bytes)))

    # (2) Serial LSTM recurrence kernel (parallel batch axis x sequential
    #     time-chunk axis).
    rec_kernel = functools.partial(
        lstm_recurrence_kernel,
        time_block=time_block, seq_len=S, hidden_size=H)

    h_seq, h_n, c_n = pl.pallas_call(
        rec_kernel,
        out_shape=(
            jax.ShapeDtypeStruct((S_pad, B, H), jnp.float32),   # all h_t
            jax.ShapeDtypeStruct((1, B, H), jnp.float32),       # h_n
            jax.ShapeDtypeStruct((1, B, H), jnp.float32),       # c_n
        ),
        grid_spec=pltpu.PrefetchScalarGridSpec(
            num_scalar_prefetch=0,
            grid=(n_bblk, n_chunks),
            in_specs=[
                pl.BlockSpec((time_block, Bblk, 4 * H), lambda b, t: (t, b, 0)),
                pl.BlockSpec((1, Bblk, H), lambda b, t: (0, b, 0)),   # h0
                pl.BlockSpec((1, Bblk, H), lambda b, t: (0, b, 0)),   # c0
                pl.BlockSpec((H, 4 * H), lambda b, t: (0, 0)),        # W_hh^T
            ],
            out_specs=[
                pl.BlockSpec((time_block, Bblk, H), lambda b, t: (t, b, 0)),
                pl.BlockSpec((1, Bblk, H), lambda b, t: (0, b, 0)),
                pl.BlockSpec((1, Bblk, H), lambda b, t: (0, b, 0)),
            ],
        ),
        compiler_params=pltpu.CompilerParams(
            dimension_semantics=("parallel", "arbitrary"),
            vmem_limit_bytes=vmem_limit),
    )(xw, h0, c0, whh_t)

    # (3) MDN head: one batched, lane-dense (Dout padded to 128) matmul in a
    #     fully parallel Pallas grid, off the serial path.
    LANE = 128
    d_pad = pl.cdiv(Dout, LANE) * LANE
    wmdn_p = jnp.pad(params["w_mdn"].T.astype(jnp.float32),
                     ((0, 0), (0, d_pad - Dout)))               # (H, d_pad)
    bmdn_p = jnp.pad(params["b_mdn"].astype(jnp.float32),
                     (0, d_pad - Dout))[None]                   # (1, d_pad)

    rows = S_pad * B
    row_blk = min(1024, pl.cdiv(rows, 8) * 8)    # sublane-aligned row tile
    rows_pad = pl.cdiv(rows, row_blk) * row_blk
    h2d = h_seq.reshape(rows, H)
    if rows_pad != rows:
        h2d = jnp.pad(h2d, ((0, rows_pad - rows), (0, 0)))

    mdn2d = pl.pallas_call(
        mdn_head_kernel,
        out_shape=jax.ShapeDtypeStruct((rows_pad, d_pad), jnp.float32),
        grid_spec=pltpu.PrefetchScalarGridSpec(
            num_scalar_prefetch=0,
            grid=(rows_pad // row_blk,),
            in_specs=[
                pl.BlockSpec((row_blk, H), lambda i: (i, 0)),
                pl.BlockSpec((H, d_pad), lambda i: (0, 0)),
                pl.BlockSpec((1, d_pad), lambda i: (0, 0)),
            ],
            out_specs=pl.BlockSpec((row_blk, d_pad), lambda i: (i, 0)),
        ),
        compiler_params=pltpu.CompilerParams(
            dimension_semantics=("parallel",)),
    )(h2d, wmdn_p, bmdn_p)

    mdn_out = mdn2d[:rows].reshape(S_pad, B, d_pad)[:S, :, :Dout]

    # (4) Glue: split exactly as the PyTorch module does.
    point = z_dim_size * dist_amount
    mus = mdn_out[:, :, :point].reshape(S, B, dist_amount, z_dim_size)
    sigmas = jnp.exp(mdn_out[:, :, point:2 * point]).reshape(
        S, B, dist_amount, z_dim_size)
    pis = jax.nn.log_softmax(
        mdn_out[:, :, 2 * point:2 * point + dist_amount], axis=-1)
    return mus, sigmas, pis, (h_n, c_n)


def _reference_forward(actions, z_dim, hidden, params, *, z_dim_size, dist_amount):
    """Pure-JAX f32 reference (lax.scan LSTM) for correctness checking."""
    h0, c0 = hidden
    inp = jnp.concatenate([actions, z_dim], axis=-1)
    S, B, _ = inp.shape
    H = h0.shape[-1]
    wih, whh = params["w_ih"], params["w_hh"]
    b = params["b_ih"] + params["b_hh"]

    def step(carry, x_t):
        h, c = carry
        gates = x_t @ wih.T + h @ whh.T + b
        i = jax.nn.sigmoid(gates[:, 0 * H:1 * H])
        f = jax.nn.sigmoid(gates[:, 1 * H:2 * H])
        g = jnp.tanh(gates[:, 2 * H:3 * H])
        o = jax.nn.sigmoid(gates[:, 3 * H:4 * H])
        c_new = f * c + i * g
        h_new = o * jnp.tanh(c_new)
        return (h_new, c_new), h_new

    (h_n, c_n), out = jax.lax.scan(step, (h0[0], c0[0]), inp)
    mdn_out = out @ params["w_mdn"].T + params["b_mdn"]
    point = z_dim_size * dist_amount
    mus = mdn_out[:, :, :point].reshape(S, B, dist_amount, z_dim_size)
    sigmas = jnp.exp(mdn_out[:, :, point:2 * point]).reshape(
        S, B, dist_amount, z_dim_size)
    pis = jax.nn.log_softmax(
        mdn_out[:, :, 2 * point:2 * point + dist_amount], axis=-1)
    return mus, sigmas, pis, (h_n[None], c_n[None])


if __name__ == "__main__":
    # Small, module-consistent shapes.
    Z_DIM, ACT, HID, K = 8, 3, 32, 5
    SEQ, BATCH = 8, 2
    DIN = Z_DIM + ACT
    DOUT = 2 * Z_DIM * K + K

    key = jax.random.PRNGKey(0)
    ks = jax.random.split(key, 9)
    bound = 1.0 / jnp.sqrt(HID)
    uni = lambda k, shape: jax.random.uniform(
        k, shape, jnp.float32, minval=-bound, maxval=bound)

    params = {
        "w_ih": uni(ks[0], (4 * HID, DIN)),
        "w_hh": uni(ks[1], (4 * HID, HID)),
        "b_ih": uni(ks[2], (4 * HID,)),
        "b_hh": uni(ks[3], (4 * HID,)),
        "w_mdn": uni(ks[4], (DOUT, HID)),
        "b_mdn": uni(ks[5], (DOUT,)),
    }

    actions = jax.random.normal(ks[6], (SEQ, BATCH, ACT), jnp.float32)
    z_dim = jax.random.normal(ks[7], (SEQ, BATCH, Z_DIM), jnp.float32)
    hidden = (jnp.zeros((1, BATCH, HID), jnp.float32),
              jnp.zeros((1, BATCH, HID), jnp.float32))

    # time_block=4 -> two sequential grid chunks: exercises the cross-chunk
    # h/c carry through the VMEM-resident h_n / c_n blocks.
    fwd = jax.jit(functools.partial(
        mdnrnn_forward, z_dim_size=Z_DIM, dist_amount=K, time_block=4))
    mus, sigmas, pis, (h_n, c_n) = fwd(actions, z_dim, hidden, params)
    jax.block_until_ready((mus, sigmas, pis, h_n, c_n))

    # Correctness check against the pure-f32 reference.  Tolerance widened
    # because the kernel feeds the MXU bf16 operands (xw / W_hh / h_prev),
    # which accumulates small rounding differences over the sequence.
    r_mus, r_sig, r_pis, (r_h, r_c) = _reference_forward(
        actions, z_dim, hidden, params, z_dim_size=Z_DIM, dist_amount=K)
    for a, b in [(mus, r_mus), (sigmas, r_sig), (pis, r_pis),
                 (h_n, r_h), (c_n, r_c)]:
        assert jnp.allclose(a, b, atol=5e-2, rtol=5e-2), "mismatch vs reference"

    assert mus.shape == (SEQ, BATCH, K, Z_DIM)
    assert sigmas.shape == (SEQ, BATCH, K, Z_DIM)
    assert pis.shape == (SEQ, BATCH, K)
    assert h_n.shape == (1, BATCH, HID) and c_n.shape == (1, BATCH, HID)

    print("KERNEL_OK")
</pallas_src>

<mosaic_0001>
module attributes {stable_mosaic.version = 11 : i64} {
  func.func @mdn_head_kernel(%arg0: i32, %arg1: memref<16x32xf32, #tpu.memory_space<vmem>>, %arg2: memref<32x128xf32, #tpu.memory_space<vmem>>, %arg3: memref<1x128xf32, #tpu.memory_space<vmem>>, %arg4: memref<16x128xf32, #tpu.memory_space<vmem>>) attributes {dimension_semantics = [#tpu.dimension_semantics<parallel>], iteration_bounds = array<i64: 1>, scalar_prefetch = 0 : i64, scratch_operands = 0 : i64, tpu.core_type = #tpu.core_type<tc>, window_params = [{transform_indices = @transform_0, window_bounds = array<i64: 16, 32>}, {pipeline_mode = #tpu.pipeline_mode<synchronous>, transform_indices = @transform_1, window_bounds = array<i64: 32, 128>}, {pipeline_mode = #tpu.pipeline_mode<synchronous>, transform_indices = @transform_2, window_bounds = array<i64: 1, 128>}, {transform_indices = @transform_3, window_bounds = array<i64: 16, 128>}]} {
    %c0 = arith.constant 0 : index
    %c0_0 = arith.constant 0 : index
    %0 = vector.load %arg1[%c0, %c0_0] : memref<16x32xf32, #tpu.memory_space<vmem>>, vector<16x32xf32>
    %c0_1 = arith.constant 0 : index
    %c0_2 = arith.constant 0 : index
    %1 = vector.load %arg2[%c0_1, %c0_2] : memref<32x128xf32, #tpu.memory_space<vmem>>, vector<32x128xf32>
    %cst = arith.constant dense<0.000000e+00> : vector<16x128xf32>
    %2 = tpu.matmul %0, %1, %cst {dimension_numbers = #tpu.dot_dimension_numbers<[1], [0], [0], [1], [0, 0, 1, 1], [], []>} : vector<16x32xf32>, vector<32x128xf32>, vector<16x128xf32> -> vector<16x128xf32>
    %c0_3 = arith.constant 0 : index
    %c0_4 = arith.constant 0 : index
    %3 = vector.load %arg3[%c0_3, %c0_4] : memref<1x128xf32, #tpu.memory_space<vmem>>, vector<1x128xf32>
    %4 = vector.broadcast %3 : vector<1x128xf32> to vector<16x128xf32>
    %5 = arith.addf %2, %4 : vector<16x128xf32>
    %c0_5 = arith.constant 0 : index
    %c0_6 = arith.constant 0 : index
    %6 = vector.load %arg4[%c0_5, %c0_6] : memref<16x128xf32, #tpu.memory_space<vmem>>, vector<16x128xf32>
    tpu.vector_store %arg4[%c0_5, %c0_6], %5 {strides = array<i32>} : memref<16x128xf32, #tpu.memory_space<vmem>>, vector<16x128xf32>,
    return
  }
  func.func @transform_0(%arg0: i32) -> (i32, i32) {
    %c0_i32 = arith.constant 0 : i32
    %c0_i32_0 = arith.constant 0 : i32
    return %arg0, %c0_i32 : i32, i32
  }
  func.func @transform_1(%arg0: i32) -> (i32, i32) {
    %c0_i32 = arith.constant 0 : i32
    %c0_i32_0 = arith.constant 0 : i32
    %c0_i32_1 = arith.constant 0 : i32
    return %c0_i32, %c0_i32_0 : i32, i32
  }
  func.func @transform_2(%arg0: i32) -> (i32, i32) {
    %c0_i32 = arith.constant 0 : i32
    %c0_i32_0 = arith.constant 0 : i32
    %c0_i32_1 = arith.constant 0 : i32
    return %c0_i32, %c0_i32_0 : i32, i32
  }
  func.func @transform_3(%arg0: i32) -> (i32, i32) {
    %c0_i32 = arith.constant 0 : i32
    %c0_i32_0 = arith.constant 0 : i32
    return %arg0, %c0_i32 : i32, i32
  }
}

module attributes {stable_mosaic.version = 11 : i64} {
  func.func @lstm_recurrence_kernel(%arg0: i32, %arg1: i32, %arg2: memref<4x2x128xbf16, #tpu.memory_space<vmem>>, %arg3: memref<1x2x32xf32, #tpu.memory_space<vmem>>, %arg4: memref<1x2x32xf32, #tpu.memory_space<vmem>>, %arg5: memref<32x128xbf16, #tpu.memory_space<vmem>>, %arg6: memref<4x2x32xf32, #tpu.memory_space<vmem>>, %arg7: memref<1x2x32xf32, #tpu.memory_space<vmem>>, %arg8: memref<1x2x32xf32, #tpu.memory_space<vmem>>) attributes {dimension_semantics = [#tpu.dimension_semantics<parallel>, #tpu.dimension_semantics<arbitrary>], iteration_bounds = array<i64: 1, 2>, scalar_prefetch = 0 : i64, scratch_operands = 0 : i64, tpu.core_type = #tpu.core_type<tc>, window_params = [{transform_indices = @transform_0, window_bounds = array<i64: 4, 2, 128>}, {transform_indices = @transform_1, window_bounds = array<i64: 1, 2, 32>}, {transform_indices = @transform_2, window_bounds = array<i64: 1, 2, 32>}, {pipeline_mode = #tpu.pipeline_mode<synchronous>, transform_indices = @transform_3, window_bounds = array<i64: 32, 128>}, {transform_indices = @transform_4, window_bounds = array<i64: 4, 2, 32>}, {transform_indices = @transform_5, window_bounds = array<i64: 1, 2, 32>}, {transform_indices = @transform_6, window_bounds = array<i64: 1, 2, 32>}]} {
    %c0_i32 = arith.constant 0 : i32
    %0 = arith.cmpi eq, %arg1, %c0_i32 : i32
    %1 = arith.extui %0 : i1 to i32
    %c0_i32_0 = arith.constant 0 : i32
    %2 = arith.cmpi ne, %1, %c0_i32_0 : i32
    scf.if %2 {
      %c0_50 = arith.constant 0 : index
      %c0_51 = arith.constant 0 : index
      %c0_52 = arith.constant 0 : index
      %150 = vector.load %arg3[%c0_50, %c0_51, %c0_52] : memref<1x2x32xf32, #tpu.memory_space<vmem>>, vector<1x2x32xf32>
      %c0_53 = arith.constant 0 : index
      %c0_54 = arith.constant 0 : index
      %c0_55 = arith.constant 0 : index
      %151 = vector.load %arg7[%c0_53, %c0_54, %c0_55] : memref<1x2x32xf32, #tpu.memory_space<vmem>>, vector<1x2x32xf32>
      tpu.vector_store %arg7[%c0_53, %c0_54, %c0_55], %150 {strides = array<i32>} : memref<1x2x32xf32, #tpu.memory_space<vmem>>, vector<1x2x32xf32>,
      %c0_56 = arith.constant 0 : index
      %c0_57 = arith.constant 0 : index
      %c0_58 = arith.constant 0 : index
      %152 = vector.load %arg4[%c0_56, %c0_57, %c0_58] : memref<1x2x32xf32, #tpu.memory_space<vmem>>, vector<1x2x32xf32>
      %c0_59 = arith.constant 0 : index
      %c0_60 = arith.constant 0 : index
      %c0_61 = arith.constant 0 : index
      %153 = vector.load %arg8[%c0_59, %c0_60, %c0_61] : memref<1x2x32xf32, #tpu.memory_space<vmem>>, vector<1x2x32xf32>
      tpu.vector_store %arg8[%c0_59, %c0_60, %c0_61], %152 {strides = array<i32>} : memref<1x2x32xf32, #tpu.memory_space<vmem>>, vector<1x2x32xf32>,
    } else {
    }
    %c0 = arith.constant 0 : index
    %c0_1 = arith.constant 0 : index
    %3 = vector.load %arg5[%c0, %c0_1] : memref<32x128xbf16, #tpu.memory_space<vmem>>, vector<32x128xbf16>
    %c0_2 = arith.constant 0 : index
    %c0_3 = arith.constant 0 : index
    %c0_4 = arith.constant 0 : index
    %4 = vector.load %arg7[%c0_2, %c0_3, %c0_4] : memref<1x2x32xf32, #tpu.memory_space<vmem>>, vector<1x2x32xf32>
    %5 = vector.shape_cast %4 : vector<1x2x32xf32> to vector<2x32xf32>
    %c0_5 = arith.constant 0 : index
    %c0_6 = arith.constant 0 : index
    %c0_7 = arith.constant 0 : index
    %6 = vector.load %arg8[%c0_5, %c0_6, %c0_7] : memref<1x2x32xf32, #tpu.memory_space<vmem>>, vector<1x2x32xf32>
    %7 = vector.shape_cast %6 : vector<1x2x32xf32> to vector<2x32xf32>
    %c0_8 = arith.constant 0 : index
    %c0_9 = arith.constant 0 : index
    %c0_10 = arith.constant 0 : index
    %8 = vector.load %arg2[%c0_8, %c0_9, %c0_10] : memref<4x2x128xbf16, #tpu.memory_space<vmem>>, vector<1x2x128xbf16>
    %9 = vector.shape_cast %8 : vector<1x2x128xbf16> to vector<2x128xbf16>
    %10 = arith.extf %9 : vector<2x128xbf16> to vector<2x128xf32>
    %11 = arith.truncf %5 : vector<2x32xf32> to vector<2x32xbf16>
    %cst = arith.constant dense<0.000000e+00> : vector<2x128xf32>
    %12 = tpu.matmul %11, %3, %cst {dimension_numbers = #tpu.dot_dimension_numbers<[1], [0], [0], [1], [0, 0, 1, 1], [], []>} : vector<2x32xbf16>, vector<32x128xbf16>, vector<2x128xf32> -> vector<2x128xf32>
    %13 = arith.addf %10, %12 : vector<2x128xf32>
    %14 = vector.extract_strided_slice %13 {offsets = [0, 0], sizes = [2, 32], strides = [1, 1]} : vector<2x128xf32> to vector<2x32xf32>
    %15 = arith.negf %14 : vector<2x32xf32>
    %16 = math.exp %15 : vector<2x32xf32>
    %cst_11 = arith.constant 1.000000e+00 : f32
    %17 = vector.broadcast %cst_11 : f32 to vector<2x32xf32>
    %18 = arith.addf %17, %16 : vector<2x32xf32>
    %19 = arith.divf %17, %18 : vector<2x32xf32>
    %20 = vector.extract_strided_slice %13 {offsets = [0, 32], sizes = [2, 32], strides = [1, 1]} : vector<2x128xf32> to vector<2x32xf32>
    %21 = arith.negf %20 : vector<2x32xf32>
    %22 = math.exp %21 : vector<2x32xf32>
    %cst_12 = arith.constant 1.000000e+00 : f32
    %23 = vector.broadcast %cst_12 : f32 to vector<2x32xf32>
    %24 = arith.addf %23, %22 : vector<2x32xf32>
    %25 = arith.divf %23, %24 : vector<2x32xf32>
    %26 = vector.extract_strided_slice %13 {offsets = [0, 64], sizes = [2, 32], strides = [1, 1]} : vector<2x128xf32> to vector<2x32xf32>
    %27 = math.tanh %26 : vector<2x32xf32>
    %28 = vector.extract_strided_slice %13 {offsets = [0, 96], sizes = [2, 32], strides = [1, 1]} : vector<2x128xf32> to vector<2x32xf32>
    %29 = arith.negf %28 : vector<2x32xf32>
    %30 = math.exp %29 : vector<2x32xf32>
    %cst_13 = arith.constant 1.000000e+00 : f32
    %31 = vector.broadcast %cst_13 : f32 to vector<2x32xf32>
    %32 = arith.addf %31, %30 : vector<2x32xf32>
    %33 = arith.divf %31, %32 : vector<2x32xf32>
    %34 = arith.mulf %25, %7 : vector<2x32xf32>
    %35 = arith.mulf %19, %27 : vector<2x32xf32>
    %36 = arith.addf %34, %35 : vector<2x32xf32>
    %37 = math.tanh %36 : vector<2x32xf32>
    %38 = arith.mulf %33, %37 : vector<2x32xf32>
    %c0_14 = arith.constant 0 : index
    %c0_15 = arith.constant 0 : index
    %c0_16 = arith.constant 0 : index
    %39 = vector.load %arg6[%c0_14, %c0_15, %c0_16] : memref<4x2x32xf32, #tpu.memory_space<vmem>>, vector<1x2x32xf32>
    %40 = vector.shape_cast %39 : vector<1x2x32xf32> to vector<2x32xf32>
    %41 = vector.shape_cast %38 : vector<2x32xf32> to vector<1x2x32xf32>
    tpu.vector_store %arg6[%c0_14, %c0_15, %c0_16], %41 {strides = array<i32>} : memref<4x2x32xf32, #tpu.memory_space<vmem>>, vector<1x2x32xf32>,
    %c1 = arith.constant 1 : index
    %c0_17 = arith.constant 0 : index
    %c0_18 = arith.constant 0 : index
    %42 = vector.load %arg2[%c1, %c0_17, %c0_18] : memref<4x2x128xbf16, #tpu.memory_space<vmem>>, vector<1x2x128xbf16>
    %43 = vector.shape_cast %42 : vector<1x2x128xbf16> to vector<2x128xbf16>
    %44 = arith.extf %43 : vector<2x128xbf16> to vector<2x128xf32>
    %45 = arith.truncf %38 : vector<2x32xf32> to vector<2x32xbf16>
    %cst_19 = arith.constant dense<0.000000e+00> : vector<2x128xf32>
    %46 = tpu.matmul %45, %3, %cst_19 {dimension_numbers = #tpu.dot_dimension_numbers<[1], [0], [0], [1], [0, 0, 1, 1], [], []>} : vector<2x32xbf16>, vector<32x128xbf16>, vector<2x128xf32> -> vector<2x128xf32>
    %47 = arith.addf %44, %46 : vector<2x128xf32>
    %48 = vector.extract_strided_slice %47 {offsets = [0, 0], sizes = [2, 32], strides = [1, 1]} : vector<2x128xf32> to vector<2x32xf32>
    %49 = arith.negf %48 : vector<2x32xf32>
    %50 = math.exp %49 : vector<2x32xf32>
    %cst_20 = arith.constant 1.000000e+00 : f32
    %51 = vector.broadcast %cst_20 : f32 to vector<2x32xf32>
    %52 = arith.addf %51, %50 : vector<2x32xf32>
    %53 = arith.divf %51, %52 : vector<2x32xf32>
    %54 = vector.extract_strided_slice %47 {offsets = [0, 32], sizes = [2, 32], strides = [1, 1]} : vector<2x128xf32> to vector<2x32xf32>
    %55 = arith.negf %54 : vector<2x32xf32>
    %56 = math.exp %55 : vector<2x32xf32>
    %cst_21 = arith.constant 1.000000e+00 : f32
    %57 = vector.broadcast %cst_21 : f32 to vector<2x32xf32>
    %58 = arith.addf %57, %56 : vector<2x32xf32>
    %59 = arith.divf %57, %58 : vector<2x32xf32>
    %60 = vector.extract_strided_slice %47 {offsets = [0, 64], sizes = [2, 32], strides = [1, 1]} : vector<2x128xf32> to vector<2x32xf32>
    %61 = math.tanh %60 : vector<2x32xf32>
    %62 = vector.extract_strided_slice %47 {offsets = [0, 96], sizes = [2, 32], strides = [1, 1]} : vector<2x128xf32> to vector<2x32xf32>
    %63 = arith.negf %62 : vector<2x32xf32>
    %64 = math.exp %63 : vector<2x32xf32>
    %cst_22 = arith.constant 1.000000e+00 : f32
    %65 = vector.broadcast %cst_22 : f32 to vector<2x32xf32>
    %66 = arith.addf %65, %64 : vector<2x32xf32>
    %67 = arith.divf %65, %66 : vector<2x32xf32>
    %68 = arith.mulf %59, %36 : vector<2x32xf32>
    %69 = arith.mulf %53, %61 : vector<2x32xf32>
    %70 = arith.addf %68, %69 : vector<2x32xf32>
    %71 = math.tanh %70 : vector<2x32xf32>
    %72 = arith.mulf %67, %71 : vector<2x32xf32>
    %c1_23 = arith.constant 1 : index
    %c0_24 = arith.constant 0 : index
    %c0_25 = arith.constant 0 : index
    %73 = vector.load %arg6[%c1_23, %c0_24, %c0_25] : memref<4x2x32xf32, #tpu.memory_space<vmem>>, vector<1x2x32xf32>
    %74 = vector.shape_cast %73 : vector<1x2x32xf32> to vector<2x32xf32>
    %75 = vector.shape_cast %72 : vector<2x32xf32> to vector<1x2x32xf32>
    tpu.vector_store %arg6[%c1_23, %c0_24, %c0_25], %75 {strides = array<i32>} : memref<4x2x32xf32, #tpu.memory_space<vmem>>, vector<1x2x32xf32>,
    %c2 = arith.constant 2 : index
    %c0_26 = arith.constant 0 : index
    %c0_27 = arith.constant 0 : index
    %76 = vector.load %arg2[%c2, %c0_26, %c0_27] : memref<4x2x128xbf16, #tpu.memory_space<vmem>>, vector<1x2x128xbf16>
    %77 = vector.shape_cast %76 : vector<1x2x128xbf16> to vector<2x128xbf16>
    %78 = arith.extf %77 : vector<2x128xbf16> to vector<2x128xf32>
    %79 = arith.truncf %72 : vector<2x32xf32> to vector<2x32xbf16>
    %cst_28 = arith.constant dense<0.000000e+00> : vector<2x128xf32>
    %80 = tpu.matmul %79, %3, %cst_28 {dimension_numbers = #tpu.dot_dimension_numbers<[1], [0], [0], [1], [0, 0, 1, 1], [], []>} : vector<2x32xbf16>, vector<32x128xbf16>, vector<2x128xf32> -> vector<2x128xf32>
    %81 = arith.addf %78, %80 : vector<2x128xf32>
    %82 = vector.extract_strided_slice %81 {offsets = [0, 0], sizes = [2, 32], strides = [1, 1]} : vector<2x128xf32> to vector<2x32xf32>
    %83 = arith.negf %82 : vector<2x32xf32>
    %84 = math.exp %83 : vector<2x32xf32>
    %cst_29 = arith.constant 1.000000e+00 : f32
    %85 = vector.broadcast %cst_29 : f32 to vector<2x32xf32>
    %86 = arith.addf %85, %84 : vector<2x32xf32>
    %87 = arith.divf %85, %86 : vector<2x32xf32>
    %88 = vector.extract_strided_slice %81 {offsets = [0, 32], sizes = [2, 32], strides = [1, 1]} : vector<2x128xf32> to vector<2x32xf32>
    %89 = arith.negf %88 : vector<2x32xf32>
    %90 = math.exp %89 : vector<2x32xf32>
    %cst_30 = arith.constant 1.000000e+00 : f32
    %91 = vector.broadcast %cst_30 : f32 to vector<2x32xf32>
    %92 = arith.addf %91, %90 : vector<2x32xf32>
    %93 = arith.divf %91, %92 : vector<2x32xf32>
    %94 = vector.extract_strided_slice %81 {offsets = [0, 64], sizes = [2, 32], strides = [1, 1]} : vector<2x128xf32> to vector<2x32xf32>
    %95 = math.tanh %94 : vector<2x32xf32>
    %96 = vector.extract_strided_slice %81 {offsets = [0, 96], sizes = [2, 32], strides = [1, 1]} : vector<2x128xf32> to vector<2x32xf32>
    %97 = arith.negf %96 : vector<2x32xf32>
    %98 = math.exp %97 : vector<2x32xf32>
    %cst_31 = arith.constant 1.000000e+00 : f32
    %99 = vector.broadcast %cst_31 : f32 to vector<2x32xf32>
    %100 = arith.addf %99, %98 : vector<2x32xf32>
    %101 = arith.divf %99, %100 : vector<2x32xf32>
    %102 = arith.mulf %93, %70 : vector<2x32xf32>
    %103 = arith.mulf %87, %95 : vector<2x32xf32>
    %104 = arith.addf %102, %103 : vector<2x32xf32>
    %105 = math.tanh %104 : vector<2x32xf32>
    %106 = arith.mulf %101, %105 : vector<2x32xf32>
    %c2_32 = arith.constant 2 : index
    %c0_33 = arith.constant 0 : index
    %c0_34 = arith.constant 0 : index
    %107 = vector.load %arg6[%c2_32, %c0_33, %c0_34] : memref<4x2x32xf32, #tpu.memory_space<vmem>>, vector<1x2x32xf32>
    %108 = vector.shape_cast %107 : vector<1x2x32xf32> to vector<2x32xf32>
    %109 = vector.shape_cast %106 : vector<2x32xf32> to vector<1x2x32xf32>
    tpu.vector_store %arg6[%c2_32, %c0_33, %c0_34], %109 {strides = array<i32>} : memref<4x2x32xf32, #tpu.memory_space<vmem>>, vector<1x2x32xf32>,
    %c3 = arith.constant 3 : index
    %c0_35 = arith.constant 0 : index
    %c0_36 = arith.constant 0 : index
    %110 = vector.load %arg2[%c3, %c0_35, %c0_36] : memref<4x2x128xbf16, #tpu.memory_space<vmem>>, vector<1x2x128xbf16>
    %111 = vector.shape_cast %110 : vector<1x2x128xbf16> to vector<2x128xbf16>
    %112 = arith.extf %111 : vector<2x128xbf16> to vector<2x128xf32>
    %113 = arith.truncf %106 : vector<2x32xf32> to vector<2x32xbf16>
    %cst_37 = arith.constant dense<0.000000e+00> : vector<2x128xf32>
    %114 = tpu.matmul %113, %3, %cst_37 {dimension_numbers = #tpu.dot_dimension_numbers<[1], [0], [0], [1], [0, 0, 1, 1], [], []>} : vector<2x32xbf16>, vector<32x128xbf16>, vector<2x128xf32> -> vector<2x128xf32>
    %115 = arith.addf %112, %114 : vector<2x128xf32>
    %116 = vector.extract_strided_slice %115 {offsets = [0, 0], sizes = [2, 32], strides = [1, 1]} : vector<2x128xf32> to vector<2x32xf32>
    %117 = arith.negf %116 : vector<2x32xf32>
    %118 = math.exp %117 : vector<2x32xf32>
    %cst_38 = arith.constant 1.000000e+00 : f32
    %119 = vector.broadcast %cst_38 : f32 to vector<2x32xf32>
    %120 = arith.addf %119, %118 : vector<2x32xf32>
    %121 = arith.divf %119, %120 : vector<2x32xf32>
    %122 = vector.extract_strided_slice %115 {offsets = [0, 32], sizes = [2, 32], strides = [1, 1]} : vector<2x128xf32> to vector<2x32xf32>
    %123 = arith.negf %122 : vector<2x32xf32>
    %124 = math.exp %123 : vector<2x32xf32>
    %cst_39 = arith.constant 1.000000e+00 : f32
    %125 = vector.broadcast %cst_39 : f32 to vector<2x32xf32>
    %126 = arith.addf %125, %124 : vector<2x32xf32>
    %127 = arith.divf %125, %126 : vector<2x32xf32>
    %128 = vector.extract_strided_slice %115 {offsets = [0, 64], sizes = [2, 32], strides = [1, 1]} : vector<2x128xf32> to vector<2x32xf32>
    %129 = math.tanh %128 : vector<2x32xf32>
    %130 = vector.extract_strided_slice %115 {offsets = [0, 96], sizes = [2, 32], strides = [1, 1]} : vector<2x128xf32> to vector<2x32xf32>
    %131 = arith.negf %130 : vector<2x32xf32>
    %132 = math.exp %131 : vector<2x32xf32>
    %cst_40 = arith.constant 1.000000e+00 : f32
    %133 = vector.broadcast %cst_40 : f32 to vector<2x32xf32>
    %134 = arith.addf %133, %132 : vector<2x32xf32>
    %135 = arith.divf %133, %134 : vector<2x32xf32>
    %136 = arith.mulf %127, %104 : vector<2x32xf32>
    %137 = arith.mulf %121, %129 : vector<2x32xf32>
    %138 = arith.addf %136, %137 : vector<2x32xf32>
    %139 = math.tanh %138 : vector<2x32xf32>
    %140 = arith.mulf %135, %139 : vector<2x32xf32>
    %c3_41 = arith.constant 3 : index
    %c0_42 = arith.constant 0 : index
    %c0_43 = arith.constant 0 : index
    %141 = vector.load %arg6[%c3_41, %c0_42, %c0_43] : memref<4x2x32xf32, #tpu.memory_space<vmem>>, vector<1x2x32xf32>
    %142 = vector.shape_cast %141 : vector<1x2x32xf32> to vector<2x32xf32>
    %143 = vector.shape_cast %140 : vector<2x32xf32> to vector<1x2x32xf32>
    tpu.vector_store %arg6[%c3_41, %c0_42, %c0_43], %143 {strides = array<i32>} : memref<4x2x32xf32, #tpu.memory_space<vmem>>, vector<1x2x32xf32>,
    %c0_44 = arith.constant 0 : index
    %c0_45 = arith.constant 0 : index
    %c0_46 = arith.constant 0 : index
    %144 = vector.load %arg7[%c0_44, %c0_45, %c0_46] : memref<1x2x32xf32, #tpu.memory_space<vmem>>, vector<1x2x32xf32>
    %145 = vector.shape_cast %144 : vector<1x2x32xf32> to vector<2x32xf32>
    %146 = vector.shape_cast %140 : vector<2x32xf32> to vector<1x2x32xf32>
    tpu.vector_store %arg7[%c0_44, %c0_45, %c0_46], %146 {strides = array<i32>} : memref<1x2x32xf32, #tpu.memory_space<vmem>>, vector<1x2x32xf32>,
    %c0_47 = arith.constant 0 : index
    %c0_48 = arith.constant 0 : index
    %c0_49 = arith.constant 0 : index
    %147 = vector.load %arg8[%c0_47, %c0_48, %c0_49] : memref<1x2x32xf32, #tpu.memory_space<vmem>>, vector<1x2x32xf32>
    %148 = vector.shape_cast %147 : vector<1x2x32xf32> to vector<2x32xf32>
    %149 = vector.shape_cast %138 : vector<2x32xf32> to vector<1x2x32xf32>
    tpu.vector_store %arg8[%c0_47, %c0_48, %c0_49], %149 {strides = array<i32>} : memref<1x2x32xf32, #tpu.memory_space<vmem>>, vector<1x2x32xf32>,
    return
  }
  func.func @transform_0(%arg0: i32, %arg1: i32) -> (i32, i32, i32) {
    %c0_i32 = arith.constant 0 : i32
    %c0_i32_0 = arith.constant 0 : i32
    return %arg1, %arg0, %c0_i32 : i32, i32, i32
  }
  func.func @transform_1(%arg0: i32, %arg1: i32) -> (i32, i32, i32) {
    %c0_i32 = arith.constant 0 : i32
    %c0_i32_0 = arith.constant 0 : i32
    %c0_i32_1 = arith.constant 0 : i32
    return %c0_i32, %arg0, %c0_i32_0 : i32, i32, i32
  }
  func.func @transform_2(%arg0: i32, %arg1: i32) -> (i32, i32, i32) {
    %c0_i32 = arith.constant 0 : i32
    %c0_i32_0 = arith.constant 0 : i32
    %c0_i32_1 = arith.constant 0 : i32
    return %c0_i32, %arg0, %c0_i32_0 : i32, i32, i32
  }
  func.func @transform_3(%arg0: i32, %arg1: i32) -> (i32, i32) {
    %c0_i32 = arith.constant 0 : i32
    %c0_i32_0 = arith.constant 0 : i32
    %c0_i32_1 = arith.constant 0 : i32
    return %c0_i32, %c0_i32_0 : i32, i32
  }
  func.func @transform_4(%arg0: i32, %arg1: i32) -> (i32, i32, i32) {
    %c0_i32 = arith.constant 0 : i32
    %c0_i32_0 = arith.constant 0 : i32
    return %arg1, %arg0, %c0_i32 : i32, i32, i32
  }
  func.func @transform_5(%arg0: i32, %arg1: i32) -> (i32, i32, i32) {
    %c0_i32 = arith.constant 0 : i32
    %c0_i32_0 = arith.constant 0 : i32
    %c0_i32_1 = arith.constant 0 : i32
    return %c0_i32, %arg0, %c0_i32_0 : i32, i32, i32
  }
  func.func @transform_6(%arg0: i32, %arg1: i32) -> (i32, i32, i32) {
    %c0_i32 = arith.constant 0 : i32
    %c0_i32_0 = arith.constant 0 : i32
    %c0_i32_1 = arith.constant 0 : i32
    return %c0_i32, %arg0, %c0_i32_0 : i32, i32, i32
  }
}

</mosaic_0001>

<bundles_post_ra>
// kernel: mdnrnn_forward.3
= control target key start
LH: loop header
LB: loop body
LE: loop exit
PB: predicated region body
PF: predicated region fallthrough
CT: control target
= control target key end

     0   :  { %vm27_vm0 = vcmask 261120   ;;  %s190_s1 = inlined_call_operand.vmem [shape: f32[32,128], index: 1, kind: input, shape index: {}]   ;;  %s191_s0 = inlined_call_operand.vmem [shape: f32[16,32], index: 0, kind: input, shape index: {}]   ;;  %s192_s2 = inlined_call_operand.vmem [shape: f32[1,128], index: 2, kind: input, shape index: {}]   ;;  %s193_s3 = inlined_call_operand.vmem [shape: f32[16,128], index: 3, kind: output, shape index: {}]  }
   0x1   :  { %v16_v0 = vld [vmem:[%s190_s1] sm:$0xff]  ;;  %v17_v1 = vld [vmem:[%s190_s1 + $0x8] sm:$0xff]  ;;  %v18_v2 = vld [vmem:[%s190_s1 + $0x10] sm:$0xff] }
   0x2   :  { %v135_v3 = vpack.c.bf16 %v17_v1, %v16_v0  ;;  %v19_v4 = vld [vmem:[%s190_s1 + $0x18] sm:$0xff]  ;;  %v14_v5 = vld [vmem:[%s191_s0] sm:$0xff]  ;;  %v15_v7 = vld [vmem:[%s191_s0 + $0x8] sm:$0xff] }
   0x3   :  { %v139_v6 = vpack.c.bf16 %v19_v4, %v18_v2  ;;  %132 = vmatprep.mubr.msk.f32.mxu0 %vm27_vm0, %v14_v5  ;;  %v115_v8 = vld [vmem:[%s192_s2] ss:$0 sm:$0xff] }
   0x4   :  { %136 = vmatprep.subr.bf16.mxu0 %v135_v3 }
   0x5   :  { %138 = vmatpush3.bf16.msra.mxu0 %v135_v3 }
   0x6   :  { %140 = vmatprep.subr.bf16.mxu0 %v139_v6 }
   0x9   :  { %142 = vmatpush3.bf16.msra.mxu0 %v139_v6 }
   0xc   :  { %133 = vmatmul.mubr.msk.f32.vlgmr.msra.gmra.mrb[0].mxu0 %vm27_vm0, %v15_v7 }
  0xdf   :  { %v134_v9 = vpop.f32.mrb[0].mxu0 }
  0xe0   :  { %v106_v10 = vadd.f32 %v134_v9, %v115_v8  ;;  %v100_v11 = vpop.f32.mrb[1].mxu0 }
  0xe1   :  { %v101_v12 = vadd.f32 %v115_v8, %v100_v11 }
  0xe2   :  { %110 = vst [vmem:[%s193_s3 + $0x8] sm:$0xff] %v106_v10 }
  0xe3   :  { %109 = vst [vmem:[%s193_s3] sm:$0xff] %v101_v12 }

// kernel: mdnrnn_forward.2
= control target key start
LH: loop header
LB: loop body
LE: loop exit
PB: predicated region body
PF: predicated region fallthrough
CT: control target
= control target key end

     0   :  { %12 = vsyncpa [#allocation3], 0  ;;  %s1319_s0 = inlined_call_operand.vmem [shape: bf16[8,2,128], index: 0, kind: input, shape index: {}]   ;;  %s1320_s1 = inlined_call_operand.vmem [shape: f32[1,2,32], index: 1, kind: input, shape index: {}]   ;;  %s1321_s2 = inlined_call_operand.vmem [shape: f32[1,2,32], index: 2, kind: input, shape index: {}]   ;;  %s1322_s3 = inlined_call_operand.vmem [shape: bf16[32,128], index: 3, kind: input, shape index: {}]   ;;  %s1323_s4 = inlined_call_operand.vmem [shape: f32[8,2,32], index: 4, kind: output, shape index: {0}]   ;;  %s1324_s5 = inlined_call_operand.hbm [shape: f32[1,2,32], index: 5, kind: output, shape index: {1}]   ;;  %s1325_s6 = inlined_call_operand.hbm [shape: f32[1,2,32], index: 6, kind: output, shape index: {2}]  }
   0x1   :  { %13 = vsyncpa [#allocation5], 0  ;;  %s1167_s21 = smov 0   ;;  %s1169_s22 = smov 0  }
   0x2   :  { %s1171_s23 = smov 0  }
   0x3 LB: > { %s884_s24 = sadd.s32 4294967295, %s1122_s23   ;;  %s28_s25 = sadd.s32 1, %s1118_s22  ;;  %s1122_s23 = sphi %s1171_s23, %s19_s23   ;;  %s1118_s22 = sphi %s1169_s22, %s1328_s22   ;;  %s1114_s21 = sphi %s1167_s21, %s1327_s21  }
   0x4   : > { %p29_p0 = scmp.ge.s32.totalorder %s28_s25, 2  ;;  %p890_p1 = scmp.ge.s32.totalorder %s1122_s23, 1 }
   0x5   : > { %p256_p2 = scmp.lt.s32.totalorder %s1122_s23, 3 }
   0x6   : > { %s1330_s25 = smov (%p29_p0, %s28_s25), 0 }
   0x7   : > { %p257_p3 = pnand %p890_p1, %p256_p2 }
   0x8   : > { %s891_s26 = sshll.u32 (!%p257_p3), %s1114_s21, 2  ;;  %p894_p5 = scmp.ne.s32.totalorder (!%p257_p3), %s1114_s21, 0 }
   0x9   : > { %260 = sbr.rel (%p257_p3) target bundleno = 2869 (0xb35), region = 36  ;;  %p300_p4 = scmp.lt.s32.totalorder (!%p257_p3), %s891_s26, 7 }
  0x10   : > { %s1332_s26 = smov (!%p300_p4, %s891_s26), 7  ;;  %328 = sbr.rel (%p894_p5) target bundleno = 23 (0x17), region = 40 }
  0x11   : > { %s1189_s29 = scalar_lea.vmem %s1319_s0, %s1332_s26  ;;  %s893_s30 = sshll.u32 %s1332_s26, 1  ;;  %v329_v0 = vld [vmem:[%s1320_s1] sm:$0x3] (!%p894_p5)  ;;  %vm330_vm0 = vcmask (!%p894_p5), 254976  }
  0x12   : > { %s1194_s9 = scalar_lea.vmem %s1323_s4, %s893_s30  ;;  %v332_v1 = vld [vmem:[%s1321_s2] sm:$0x3] (!%p894_p5)  ;;  %331 = vst.msk [vmem:[#allocation2] sm:$0x3] (!%p894_p5), %vm330_vm0, %v329_v0 }
  0x13   : > { %333 = vst.msk [vmem:[#allocation4] sm:$0x3] (!%p894_p5), %vm330_vm0, %v332_v1 }
  0x17 PF: > { %v1006_v2 = vld [vmem:[%s1322_s3] sm:$0xff]   ;;  %v1124_v3 = vmov 0.0   ;;  %v1007_v4 = vld [vmem:[%s1322_s3 + $0x8] sm:$0xff]   ;;  %vm1125_vm1 = vmmov 0   ;;  %vm355_vm2 = vcmask 261120   ;;  %s1126_s18 = smov 64  }
  0x18   : > { %930 = vmatprep.subr.bf16.mxu0 %v1124_v3  ;;  %938 = vmatprep.subr.bf16.mxu1 %v1124_v3  ;;  %v340_v7 = vld [vmem:[%s1189_s29] sm:$0x1]  ;;  %s1127_s19 = smov 32   ;;  %v900_v31 = vld [vmem:[%s1189_s29 + $0x1] sm:$0x1]  ;;  %vm446_vm3 = vcmask 254976  }
  0x19   : > { %931 = vmatpush3.bf16.msra.mxu0 %v1006_v2  ;;  %934 = vmatprep.mubr.msk.bf16.mxu0 %vm1125_vm1, %v1124_v3  ;;  %v338_v5 = vld [vmem:[#allocation2] sm:$0x3]  ;;  %v341_v8 = vunpack.c.l.bf16 %v340_v7  ;;  %v450_v32 = vunpack.c.l.bf16 %v900_v31  ;;  %v904_v53 = vld [vmem:[%s1189_s29 + $0x2] sm:$0x1]  ;;  %s1129_s20 = smov 96   ;;  %p1253_p6 = scmp.eq.s32.totalorder %s884_s24, 1 }
  0x1a   : > { %932 = vmatprep.subr.bf16.mxu0 %v1124_v3  ;;  %939 = vmatpush3.bf16.msra.mxu1 %v1006_v2  ;;  %v342_v6 = vpack.c.bf16 %v338_v5, %v338_v5  ;;  %v899_v15 = vld.sshfl [vmem:[#allocation4] sm:$0x3 pattern:$0x76325410]  ;;  %v538_v54 = vunpack.c.l.bf16 %v904_v53  ;;  %s1130_s26 = smov [#allocation4]  }
  0x1b   : > { %940 = vmatprep.subr.bf16.mxu1 %v1124_v3  ;;  %942 = vmatprep.mubr.msk.bf16.mxu1 %vm1125_vm1, %v1124_v3  ;;  %s759_s27 = sshll.u32 %s1130_s26, 4  ;;  %s760_s27 = int_to_ptr.vmem [resolvable:$true] %s759_s27 }
  0x1c   : > { %s1040_s28 = scalar_lea.vmem %s760_s27, 32  ;;  %p1047_p10 = scmp.lt.s32.totalorder %s760_s27, %s760_s27 }
  0x1d   : > { %933 = vmatpush3.bf16.msra.mxu0 %v1007_v4  ;;  %p1041_p7 = scmp.ne.s32.totalorder %s760_s27, %s1040_s28  ;;  %p1048_p11 = scmp.lt.s32.totalorder %s1040_s28, %s1040_s28 }
  0x1e   : > { %941 = vmatpush3.bf16.msra.mxu1 %v1007_v4  ;;  %946 = vmatprep.subr.bf16.mxu0 %v1124_v3 }
  0x1f   : > { %954 = vmatprep.subr.bf16.mxu1 %v1124_v3  ;;  %p1042_p8 = pnand %p1041_p7, %p1253_p6  ;;  %p1049_p12 = por %p1048_p11, %p1047_p10 }
  0x20   : > { %935 = vmatmul.mubr.msk.bf16.vlgmr.msra.gmra.mrb[0].mxu0 %vm355_vm2, %v342_v6 }
  0x21   : > { %947 = vmatpush3.bf16.msra.mxu0 %v1006_v2  ;;  %950 = vmatprep.mubr.msk.bf16.mxu0 %vm1125_vm1, %v1124_v3  ;;  %p1043_p9 = pneg %p1042_p8 }
  0x22   : > { %948 = vmatprep.subr.bf16.mxu0 %v1124_v3 }
  0x23   : > { %p1050_p13 = pnand %p1049_p12, %p1043_p9 }
  0x25   : > { %949 = vmatpush3.bf16.msra.mxu0 %v1007_v4 }
  0xf3   : > { %v393_v9 = vpop.f32.mrb[0].mxu0 }
  0xf4   : > { %v399_v10 = vadd.f32 %v393_v9, %v341_v8  ;;  %v936_v11 = vpop.f32.mrb[1].mxu0 }
  0xf5   : > { %v396_v12 = vpop.f32.mrb[2].mxu0  ;;  %v908_v11 = vld [vmem:[%s1189_s29 + $0x3] sm:$0x1] }
  0xf6   : > { %1008 = vtanh.f32 %v399_v10  ;;  %v937_v13 = vpop.f32.mrb[3].mxu0  ;;  %v898_v16 = vmul.f32 -1.442695, %v399_v10  ;;  %v626_v12 = vunpack.c.l.bf16 %v908_v11 }
  0xf8   : > { %1010 = vpow2.f32 %v898_v16 }
 0x100   : > { %v1009_v14 = vpop.eup %1008 }
 0x101   : > { %420 = vrot.lane.b32.xlu0 %v1009_v14, %s1126_s18 }
 0x102   : > { %v1011_v17 = vpop.eup %1010 }
 0x103   : > { %v403_v18 = vadd.f32 1.0, %v1011_v17 }
 0x105   : > { %415 = vrot.lane.b32.xlu0 %v899_v15, %s1127_s19  ;;  %1012 = vrcp.f32 %v403_v18 }
 0x10f   : > { %v1013_v19 = vpop.eup %1012 }
 0x173   : > { %v421_v20 = vpop.permute.xlu0 %420 }
 0x174   : > { %v423_v21 = vmul.f32 %v1013_v19, %v421_v20 }
 0x176   : > { %425 = vrot.lane.b32.xlu1 %v423_v21, %s1127_s19 }
 0x177   : > { %v416_v22 = vpop.permute.xlu0 %415 }
 0x178   : > { %v418_v23 = vmul.f32 %v1013_v19, %v416_v22  ;;  %v1128_v22 = vmov 1983009808  }
 0x1e8   : > { %v426_v24 = vpop.permute.xlu1 %425 }
 0x1e9   : > { %v428_v25 = vadd.f32 %v426_v24, %v418_v23  ;;  %v437_v23 = vunpack.c.l.s4 %v1128_v22  ;;  %v439_v24 = vlaneseq }
 0x1eb   : > { %1014 = vtanh.f32 %v428_v25 }
 0x1f5   : > { %v1015_v26 = vpop.eup %1014 }
 0x1f6   : > { %431 = vrot.lane.b32.xlu1 %v1015_v26, %s1126_s18  ;;  %v440_v26 = vshrl.u32 %v439_v24, 7 }
 0x268   : > { %v432_v27 = vpop.permute.xlu1 %431 }
 0x269   : > { %v1217_v28 = vmul.f32 %v1013_v19, %v432_v27 }
 0x26b   : > { %v451_v29 = vpack.c.bf16 %v1217_v28, %v1217_v28 }
 0x26d   : > { %453 = vrot.lane.b32.xlu0 %v451_v29, %s1127_s19 }
 0x2df   : > { %v454_v30 = vpop.permute.xlu0 %453 }
 0x2e0   : > { %943 = vmatmul.mubr.msk.bf16.vlgmr.msra.gmra.mrb[0].mxu1 %vm355_vm2, %v454_v30 }
 0x2e1   : > { %955 = vmatpush3.bf16.msra.mxu1 %v1006_v2  ;;  %958 = vmatprep.mubr.msk.bf16.mxu1 %vm1125_vm1, %v1124_v3 }
 0x2e2   : > { %956 = vmatprep.subr.bf16.mxu1 %v1124_v3 }
 0x2e5   : > { %957 = vmatpush3.bf16.msra.mxu1 %v1007_v4 }
 0x3b3   : > { %v492_v33 = vpop.f32.mrb[0].mxu1 }
 0x3b4   : > { %v498_v34 = vadd.f32 %v492_v33, %v450_v32  ;;  %v944_v35 = vpop.f32.mrb[1].mxu1 }
 0x3b5   : > { %v495_v36 = vpop.f32.mrb[2].mxu1 }
 0x3b6   : > { %1016 = vtanh.f32 %v498_v34  ;;  %v945_v37 = vpop.f32.mrb[3].mxu1  ;;  %v902_v39 = vmul.f32 -1.442695, %v498_v34 }
 0x3b8   : > { %1018 = vpow2.f32 %v902_v39 }
 0x3c0   : > { %v1017_v38 = vpop.eup %1016 }
 0x3c1   : > { %508 = vrot.lane.b32.xlu1 %v1017_v38, %s1126_s18 }
 0x3c2   : > { %v1019_v40 = vpop.eup %1018 }
 0x3c3   : > { %v502_v41 = vadd.f32 1.0, %v1019_v40 }
 0x3c5   : > { %1020 = vrcp.f32 %v502_v41 }
 0x3cf   : > { %v1021_v42 = vpop.eup %1020 }
 0x3d0   : > { %v506_v45 = vmul.f32 %v1021_v42, %v428_v25  ;;  %v438_v25 = vunpack.c.0.s8 %v437_v23 }
 0x3d2   : > { %v441_v30 = vsub.s32 %v438_v25, %v440_v26 }
 0x3d4   : > { %v442_v32 = vrot.slane %v1217_v28, %v441_v30 }
 0x433   : > { %v509_v43 = vpop.permute.xlu1 %508 }
 0x434   : > { %v511_v44 = vmul.f32 %v1021_v42, %v509_v43 }
 0x436   : > { %513 = vrot.lane.b32.xlu0 %v511_v44, %s1127_s19 }
 0x4a8   : > { %v514_v46 = vpop.permute.xlu0 %513 }
 0x4a9   : > { %v516_v47 = vadd.f32 %v514_v46, %v506_v45 }
 0x4ab   : > { %1022 = vtanh.f32 %v516_v47 }
 0x4b5   : > { %v1023_v48 = vpop.eup %1022 }
 0x4b6   : > { %519 = vrot.lane.b32.xlu1 %v1023_v48, %s1126_s18 }
 0x528   : > { %v520_v49 = vpop.permute.xlu1 %519 }
 0x529   : > { %v1228_v50 = vmul.f32 %v1021_v42, %v520_v49 }
 0x52b   : > { %v539_v51 = vpack.c.bf16 %v1228_v50, %v1228_v50  ;;  %v530_v28 = vrot.slane %v1228_v50, %v441_v30 }
 0x52d   : > { %541 = vrot.lane.b32.xlu0 %v539_v51, %s1127_s19 }
 0x59f   : > { %v542_v52 = vpop.permute.xlu0 %541 }
 0x5a0   : > { %951 = vmatmul.mubr.msk.bf16.vlgmr.msra.gmra.mrb[4].mxu0 %vm355_vm2, %v542_v52 }
 0x673   : > { %v580_v55 = vpop.f32.mrb[4].mxu0 }
 0x674   : > { %v586_v56 = vadd.f32 %v580_v55, %v538_v54  ;;  %v952_v57 = vpop.f32.mrb[5].mxu0 }
 0x675   : > { %v583_v58 = vpop.f32.mrb[6].mxu0 }
 0x676   : > { %1024 = vtanh.f32 %v586_v56  ;;  %v953_v59 = vpop.f32.mrb[7].mxu0  ;;  %v906_v61 = vmul.f32 -1.442695, %v586_v56 }
 0x678   : > { %1026 = vpow2.f32 %v906_v61 }
 0x680   : > { %v1025_v60 = vpop.eup %1024 }
 0x681   : > { %596 = vrot.lane.b32.xlu1 %v1025_v60, %s1126_s18 }
 0x682   : > { %v1027_v62 = vpop.eup %1026 }
 0x683   : > { %v590_v63 = vadd.f32 1.0, %v1027_v62 }
 0x685   : > { %1028 = vrcp.f32 %v590_v63 }
 0x68f   : > { %v1029_v0 = vpop.eup %1028 }
 0x690   : > { %v594_v3 = vmul.f32 %v1029_v0, %v516_v47 }
 0x6f3   : > { %v597_v1 = vpop.permute.xlu1 %596 }
 0x6f4   : > { %v599_v2 = vmul.f32 %v1029_v0, %v597_v1 }
 0x6f6   : > { %601 = vrot.lane.b32.xlu0 %v599_v2, %s1127_s19 }
 0x768   : > { %v602_v4 = vpop.permute.xlu0 %601 }
 0x769   : > { %v604_v5 = vadd.f32 %v602_v4, %v594_v3 }
 0x76b   : > { %1030 = vtanh.f32 %v604_v5 }
 0x775   : > { %v1031_v6 = vpop.eup %1030 }
 0x776   : > { %607 = vrot.lane.b32.xlu1 %v1031_v6, %s1126_s18 }
 0x7e8   : > { %v608_v7 = vpop.permute.xlu1 %607 }
 0x7e9   : > { %v610_v8 = vmul.f32 %v1029_v0, %v608_v7 }
 0x7eb   : > { %v627_v9 = vpack.c.bf16 %v610_v8, %v610_v8  ;;  %v618_v33 = vrot.slane %v610_v8, %v441_v30 }
 0x7ed   : > { %629 = vrot.lane.b32.xlu0 %v627_v9, %s1127_s19 }
 0x85f   : > { %v630_v10 = vpop.permute.xlu0 %629 }
 0x860   : > { %959 = vmatmul.mubr.msk.bf16.vlgmr.msra.gmra.mrb[4].mxu1 %vm355_vm2, %v630_v10 }
 0x933   : > { %v668_v13 = vpop.f32.mrb[4].mxu1 }
 0x934   : > { %v674_v14 = vadd.f32 %v668_v13, %v626_v12  ;;  %v960_v15 = vpop.f32.mrb[5].mxu1 }
 0x935   : > { %v671_v16 = vpop.f32.mrb[6].mxu1 }
 0x936   : > { %1032 = vtanh.f32 %v674_v14  ;;  %v961_v17 = vpop.f32.mrb[7].mxu1  ;;  %v910_v19 = vmul.f32 -1.442695, %v674_v14 }
 0x938   : > { %1034 = vpow2.f32 %v910_v19 }
 0x940   : > { %v1033_v18 = vpop.eup %1032 }
 0x941   : > { %684 = vrot.lane.b32.xlu1 %v1033_v18, %s1126_s18 }
 0x942   : > { %v1035_v20 = vpop.eup %1034 }
 0x943   : > { %v678_v21 = vadd.f32 1.0, %v1035_v20 }
 0x945   : > { %1036 = vrcp.f32 %v678_v21 }
 0x94f   : > { %v1037_v27 = vpop.eup %1036 }
 0x950   : > { %v682_v34 = vmul.f32 %v1037_v27, %v604_v5 }
 0x9b3   : > { %v685_v29 = vpop.permute.xlu1 %684 }
 0x9b4   : > { %v687_v31 = vmul.f32 %v1037_v27, %v685_v29 }
 0x9b6   : > { %689 = vrot.lane.b32.xlu0 %v687_v31, %s1127_s19 }
 0x9ba   : > { %443 = vrot.lane.b32.xlu0 %v442_v32, %s1127_s19 }
 0x9be   : > { %619 = vrot.lane.b32.xlu0 %v618_v33, %s1127_s19 }
 0xa28   : > { %v690_v35 = vpop.permute.xlu0 %689 }
 0xa29   : > { %v692_v36 = vadd.f32 %v690_v35, %v682_v34 }
 0xa2b   : > { %1038 = vtanh.f32 %v692_v36  ;;  %v720_v37 = vrot.slane %v692_v36, %v441_v30 }
 0xa2c   : > { %v444_v38 = vpop.permute.xlu0 %443 }
 0xa2d   : > { %447 = vst.msk [vmem:[%s1194_s9] sm:$0x3] %vm446_vm3, %v444_v38  ;;  %721 = vrot.lane.b32.xlu0 %v720_v37, %s1129_s20 }
 0xa30   : > { %v620_v40 = vpop.permute.xlu0 %619 }
 0xa35   : > { %v1039_v39 = vpop.eup %1038 }
 0xa36   : > { %695 = vrot.lane.b32.xlu1 %v1039_v39, %s1126_s18 }
 0xa3a   : > { %531 = vrot.lane.b32.xlu1 %v530_v28, %s1127_s19 }
 0xa9f   : > { %v722_v41 = vpop.permute.xlu0 %721 }
 0xaa0   : > { %724 = vst.msk [vmem:[#allocation4] sm:$0x3] %vm446_vm3, %v722_v41 }
 0xaa1   : > { %1053 = shalt.err (!%p1050_p13)
}
 0xaa2   : > { %s1054_s30 = scalar_lea.hbm %s1325_s6, 32 }
 0xaa3   : > { %p1055_p0 = scmp.ne.s32.totalorder %s1325_s6, %s1054_s30  ;;  %p1060_p3 = scmp.lt.u32.totalorder %s1054_s30, %s1325_s6 }
 0xaa5   : > { %p1056_p1 = pnand %p1055_p0, %p1253_p6 }
 0xaa7   : > { %p1057_p2 = pneg %p1056_p1 }
 0xaa9   : > { %p1062_p4 = pnand %p1060_p3, %p1057_p2 }
 0xaab   : > { %1065 = shalt.err (!%p1062_p4)
}
 0xaac   : > { %965 = dma.vmem_to_hbm [thread:$0]  (%p1253_p6), %s760_s27, 32, %s1325_s6, [#allocation5]   ;;  %v696_v42 = vpop.permute.xlu1 %695  ;;  %907 = vst.msk [vmem:[%s1194_s9 + $0x4] sm:$0x3] %vm446_vm3, %v620_v40 }
 0xaad   : > { %v698_v43 = vmul.f32 %v1037_v27, %v696_v42  ;;  %s1131_s14 = smov [#allocation2]  }
 0xaae   : > { %s746_s15 = sshll.u32 %s1131_s14, 4  ;;  %s747_s15 = int_to_ptr.vmem [resolvable:$true] %s746_s15 }
 0xaaf   : > { %v706_v44 = vrot.slane %v698_v43, %v441_v30  ;;  %s1066_s16 = scalar_lea.vmem %s747_s15, 32  ;;  %p1073_p9 = scmp.lt.s32.totalorder %s747_s15, %s747_s15 }
 0xab0   : > { %v532_v45 = vpop.permute.xlu1 %531  ;;  %p1067_p5 = scmp.ne.s32.totalorder %s747_s15, %s1066_s16  ;;  %p1074_p10 = scmp.lt.s32.totalorder %s1066_s16, %s1066_s16 }
 0xab1   : > { %903 = vst.msk [vmem:[%s1194_s9 + $0x2] sm:$0x3] %vm446_vm3, %v532_v45  ;;  %707 = vrot.lane.b32.xlu1 %v706_v44, %s1127_s19 }
 0xab2   : > { %p1068_p7 = pnand %p1067_p5, %p1253_p6  ;;  %p1075_p11 = por %p1074_p10, %p1073_p9 }
 0xab4   : > { %p1069_p8 = pneg %p1068_p7 }
 0xab6   : > { %p1076_p12 = pnand %p1075_p11, %p1069_p8 }
 0xb23   : > { %v708_v46 = vpop.permute.xlu1 %707 }
 0xb24   : > { %911 = vst.msk [vmem:[%s1194_s9 + $0x6] sm:$0x3] %vm446_vm3, %v708_v46  ;;  %712 = vst.msk [vmem:[#allocation2] sm:$0x3] %vm446_vm3, %v708_v46 }
 0xb25   : > { %1079 = shalt.err (!%p1076_p12)
}
 0xb26   : > { %s1080_s19 = scalar_lea.hbm %s1324_s5, 32 }
 0xb27   : > { %p1081_p13 = scmp.ne.s32.totalorder %s1324_s5, %s1080_s19  ;;  %p1086_p2 = scmp.lt.u32.totalorder %s1080_s19, %s1324_s5 }
 0xb29   : > { %p1082_p0 = pnand %p1081_p13, %p1253_p6 }
 0xb2b   : > { %p1083_p1 = pneg %p1082_p0 }
 0xb2d   : > { %p1088_p3 = pnand %p1086_p2, %p1083_p1 }
 0xb2f   : > { %1091 = shalt.err (!%p1088_p3)
}
 0xb30   : > { %963 = dma.vmem_to_hbm [thread:$0]  (%p1253_p6), %s747_s15, 32, %s1324_s5, [#allocation3]  }
 0xb31   : > { %1105 = dma.done.wait (%p1253_p6), [#allocation3], 32  }
 0xb32   : > { %1107 = vsyncadd (%p1253_p6), [#allocation3], 4294967264 }
 0xb33   : > { %1109 = dma.done.wait (%p1253_p6), [#allocation5], 32  }
 0xb34   : > { %1111 = vsyncadd (%p1253_p6), [#allocation5], 4294967264 }
 0xb35 PF: > { %s19_s23 = sadd.s32 1, %s1122_s23   ;;  %s1327_s21 = smov %s1118_s22 }
 0xb36   : > { %p16_p4 = scmp.ge.s32.totalorder %s19_s23, 4   ;;  %s1328_s22 = smov %s1330_s25 }
 0xb38   :  { %18 = sbr.rel (!%p16_p4) target bundleno = 3 (0x3), region = 101 }
 0xb3f   :  { %787 = vsyncpa [#allocation3], 1 }
 0xb40   :  { %789 = vsyncpa [#allocation3 + $0x1], 1 }
 0xb41   :  { %790 = vsyncpa [#allocation5], 1 }

</bundles_post_ra>
